<compile_context>
chip_gen: v6e
topology: v6e:2x2x1
jax: 0.10.0
libtpu: 0.0.40
codegen_flags: <defaults>
</compile_context>

<pallas_src>
import numpy as np
import jax
import jax.numpy as jnp
from jax.experimental import pallas as pl
from jax.experimental.pallas import tpu as pltpu

IN_PAD = 8       # obs dim (3) padded to sublane-aligned 8
OUT_PAD = 128    # action dim (1) padded to one full lane group (lane-dense head/outputs)
HID1, HID2, HID3 = 64, 128, 64

_VMEM = pltpu.MemorySpace.VMEM


def actor_kernel(x_ref, w1_ref, b1_ref, w2_ref, b2_ref, w3_ref, b3_ref,
                 wh_ref, bh_ref, out_ref):
    x = x_ref[...]                                                     # bf16 (B, IN_PAD)

    h1 = jnp.maximum(
        jnp.dot(x, w1_ref[...], preferred_element_type=jnp.float32) + b1_ref[...], 0.0)
    h2 = jnp.maximum(
        jnp.dot(h1.astype(jnp.bfloat16), w2_ref[...],
                preferred_element_type=jnp.float32) + b2_ref[...], 0.0)
    h3 = jnp.maximum(
        jnp.dot(h2.astype(jnp.bfloat16), w3_ref[...],
                preferred_element_type=jnp.float32) + b3_ref[...], 0.0)

    # Fused mu/std head: one MXU pass over (64, 2*OUT_PAD), then lane-aligned slices.
    head = jnp.dot(h3.astype(jnp.bfloat16), wh_ref[...],
                   preferred_element_type=jnp.float32) + bh_ref[...]
    mu = jnp.tanh(head[:, :OUT_PAD]) * 2.0
    s = head[:, OUT_PAD:]
    # Stable single-exp softplus: max(s,0) + log1p(exp(-|s|))
    std = jnp.maximum(s, 0.0) + jnp.log1p(jnp.exp(-jnp.abs(s))) + 0.35

    # Lane-dense packed output slab: [mu | std], 128-lane aligned full-width stores.
    out_ref[:, 0:OUT_PAD] = mu
    out_ref[:, OUT_PAD:2 * OUT_PAD] = std


def pack_actor_params(params, in_dim, out_dim):
    """Pad / fuse raw f32 params into the kernel layout (bf16 weights, f32 biases)."""
    w1p = jnp.zeros((IN_PAD, HID1), jnp.float32).at[:in_dim, :].set(params["w1"])
    wh = jnp.zeros((HID3, 2 * OUT_PAD), jnp.float32)
    wh = wh.at[:, :out_dim].set(params["wmu"])
    wh = wh.at[:, OUT_PAD:OUT_PAD + out_dim].set(params["wstd"])
    bh = jnp.zeros((1, 2 * OUT_PAD), jnp.float32)
    bh = bh.at[:, :out_dim].set(params["bmu"])
    bh = bh.at[:, OUT_PAD:OUT_PAD + out_dim].set(params["bstd"])
    bf16 = jnp.bfloat16
    return {
        "w1": w1p.astype(bf16), "b1": params["b1"],
        "w2": params["w2"].astype(bf16), "b2": params["b2"],
        "w3": params["w3"].astype(bf16), "b3": params["b3"],
        "wh": wh.astype(bf16), "bh": bh,
    }


def actor_forward(x, packed, eps, out_dim):
    """Fused Actor forward. Returns (action, mu, std), each (B, out_dim)."""
    B, in_dim = x.shape
    Bp = ((B + 7) // 8) * 8  # sublane-align the batch only (no 128-padding)

    xp = x
    if Bp != B or in_dim != IN_PAD:
        xp = jnp.pad(x, ((0, Bp - B), (0, IN_PAD - in_dim)))
    xp = xp.astype(jnp.bfloat16)

    flops = 2 * Bp * (IN_PAD * HID1 + HID1 * HID2 + HID2 * HID3 + HID3 * 2 * OUT_PAD)
    transcendentals = 3 * Bp * OUT_PAD  # tanh + exp + log1p per padded head lane
    bytes_accessed = (2 * xp.size + 4 * Bp * 2 * OUT_PAD
                      + sum(int(np.prod(v.shape)) * v.dtype.itemsize
                            for v in packed.values()))

    vspec = pl.BlockSpec(memory_space=_VMEM)  # whole array, VMEM-resident, single step

    out = pl.pallas_call(
        actor_kernel,
        out_shape=jax.ShapeDtypeStruct((Bp, 2 * OUT_PAD), jnp.float32),
        in_specs=[vspec] * 9,
        out_specs=vspec,
        compiler_params=pltpu.CompilerParams(
            vmem_limit_bytes=32 * 1024 * 1024,  # far above the <1 MiB actually needed
        ),
        cost_estimate=pl.CostEstimate(
            flops=flops, transcendentals=transcendentals, bytes_accessed=bytes_accessed),
    )(xp,
      packed["w1"], packed["b1"],
      packed["w2"], packed["b2"],
      packed["w3"], packed["b3"],
      packed["wh"], packed["bh"])

    mu = out[:B, 0:out_dim]
    std = out[:B, OUT_PAD:OUT_PAD + out_dim]
    # rsample: reparameterized sample done on the tiny sliced arrays in the wrapper
    # (removes the eps DMA/pad and one third of the kernel's output writeback).
    action = mu + std * eps
    return action, mu, std


def _orthogonal(key, shape, gain):
    """Orthogonal init matching nn.init.orthogonal_ semantics (up to RNG)."""
    return jax.nn.initializers.orthogonal(scale=gain)(key, shape, jnp.float32)


def make_actor_params(key, in_dim, out_dim):
    k1, k2, k3, k4, k5 = jax.random.split(key, 5)
    g = float(np.sqrt(2.0))
    # Weights stored as (in_features, out_features); biases as (1, out_features).
    return {
        "w1": _orthogonal(k1, (in_dim, HID1), g),
        "b1": jnp.zeros((1, HID1), jnp.float32),
        "w2": _orthogonal(k2, (HID1, HID2), g),
        "b2": jnp.zeros((1, HID2), jnp.float32),
        "w3": _orthogonal(k3, (HID2, HID3), g),
        "b3": jnp.zeros((1, HID3), jnp.float32),
        "wmu": _orthogonal(k4, (HID3, out_dim), 0.01),
        "bmu": jnp.zeros((1, out_dim), jnp.float32),
        "wstd": _orthogonal(k5, (HID3, out_dim), 0.01),
        "bstd": jnp.zeros((1, out_dim), jnp.float32),
    }


if __name__ == "__main__":
    in_dim, out_dim, batch = 3, 1, 16  # Pendulum-v1: obs dim 3, action dim 1

    key = jax.random.PRNGKey(0)
    kp, kx, ke = jax.random.split(key, 3)

    params = make_actor_params(kp, in_dim, out_dim)
    packed = pack_actor_params(params, in_dim, out_dim)
    state = jax.random.normal(kx, (batch, in_dim), jnp.float32)
    eps = jax.random.normal(ke, (batch, out_dim), jnp.float32)  # N(0,1) noise for rsample
    # TODO(synk): eps could be generated in-kernel via pltpu.prng_*; kept explicit for
    # deterministic parity with the reference.

    action, mu, std = actor_forward(state, packed, eps, out_dim)
    jax.block_until_ready((action, mu, std))

    # Reference check in plain JAX using the unpadded / unfused f32 params.
    def ref(x):
        h = jax.nn.relu(x @ params["w1"] + params["b1"])
        h = jax.nn.relu(h @ params["w2"] + params["b2"])
        h = jax.nn.relu(h @ params["w3"] + params["b3"])
        mu_r = jnp.tanh(h @ params["wmu"] + params["bmu"]) * 2.0
        std_r = jax.nn.softplus(h @ params["wstd"] + params["bstd"]) + 0.35
        return mu_r + std_r * eps, mu_r, std_r

    a_r, mu_r, std_r = ref(state)
    # bf16 MXU datapath -> relaxed tolerances vs. the f32 reference.
    np.testing.assert_allclose(np.asarray(action), np.asarray(a_r), rtol=2e-2, atol=2e-2)
    np.testing.assert_allclose(np.asarray(mu), np.asarray(mu_r), rtol=2e-2, atol=2e-2)
    np.testing.assert_allclose(np.asarray(std), np.asarray(std_r), rtol=2e-2, atol=2e-2)

    print("KERNEL_OK")
</pallas_src>

<mosaic_0001>
module attributes {stable_mosaic.version = 11 : i64} {
  func.func @actor_kernel(%arg0: memref<16x8xbf16, #tpu.memory_space<vmem>>, %arg1: memref<8x64xbf16, #tpu.memory_space<vmem>>, %arg2: memref<1x64xf32, #tpu.memory_space<vmem>>, %arg3: memref<64x128xbf16, #tpu.memory_space<vmem>>, %arg4: memref<1x128xf32, #tpu.memory_space<vmem>>, %arg5: memref<128x64xbf16, #tpu.memory_space<vmem>>, %arg6: memref<1x64xf32, #tpu.memory_space<vmem>>, %arg7: memref<64x256xbf16, #tpu.memory_space<vmem>>, %arg8: memref<1x256xf32, #tpu.memory_space<vmem>>, %arg9: memref<16x256xf32, #tpu.memory_space<vmem>>) attributes {dimension_semantics = [], scalar_prefetch = 0 : i64, scratch_operands = 0 : i64, tpu.core_type = #tpu.core_type<tc>} {
    %c0 = arith.constant 0 : index
    %c0_0 = arith.constant 0 : index
    %0 = vector.load %arg0[%c0, %c0_0] : memref<16x8xbf16, #tpu.memory_space<vmem>>, vector<16x8xbf16>
    %c0_1 = arith.constant 0 : index
    %c0_2 = arith.constant 0 : index
    %1 = vector.load %arg1[%c0_1, %c0_2] : memref<8x64xbf16, #tpu.memory_space<vmem>>, vector<8x64xbf16>
    %cst = arith.constant dense<0.000000e+00> : vector<16x64xf32>
    %2 = tpu.matmul %0, %1, %cst {dimension_numbers = #tpu.dot_dimension_numbers<[1], [0], [0], [1], [0, 0, 1, 1], [], []>} : vector<16x8xbf16>, vector<8x64xbf16>, vector<16x64xf32> -> vector<16x64xf32>
    %c0_3 = arith.constant 0 : index
    %c0_4 = arith.constant 0 : index
    %3 = vector.load %arg2[%c0_3, %c0_4] : memref<1x64xf32, #tpu.memory_space<vmem>>, vector<1x64xf32>
    %4 = vector.broadcast %3 : vector<1x64xf32> to vector<16x64xf32>
    %5 = arith.addf %2, %4 : vector<16x64xf32>
    %cst_5 = arith.constant 0.000000e+00 : f32
    %6 = vector.broadcast %cst_5 : f32 to vector<16x64xf32>
    %7 = arith.maximumf %5, %6 : vector<16x64xf32>
    %8 = arith.truncf %7 : vector<16x64xf32> to vector<16x64xbf16>
    %c0_6 = arith.constant 0 : index
    %c0_7 = arith.constant 0 : index
    %9 = vector.load %arg3[%c0_6, %c0_7] : memref<64x128xbf16, #tpu.memory_space<vmem>>, vector<64x128xbf16>
    %cst_8 = arith.constant dense<0.000000e+00> : vector<16x128xf32>
    %10 = tpu.matmul %8, %9, %cst_8 {dimension_numbers = #tpu.dot_dimension_numbers<[1], [0], [0], [1], [0, 0, 1, 1], [], []>} : vector<16x64xbf16>, vector<64x128xbf16>, vector<16x128xf32> -> vector<16x128xf32>
    %c0_9 = arith.constant 0 : index
    %c0_10 = arith.constant 0 : index
    %11 = vector.load %arg4[%c0_9, %c0_10] : memref<1x128xf32, #tpu.memory_space<vmem>>, vector<1x128xf32>
    %12 = vector.broadcast %11 : vector<1x128xf32> to vector<16x128xf32>
    %13 = arith.addf %10, %12 : vector<16x128xf32>
    %cst_11 = arith.constant 0.000000e+00 : f32
    %14 = vector.broadcast %cst_11 : f32 to vector<16x128xf32>
    %15 = arith.maximumf %13, %14 : vector<16x128xf32>
    %16 = arith.truncf %15 : vector<16x128xf32> to vector<16x128xbf16>
    %c0_12 = arith.constant 0 : index
    %c0_13 = arith.constant 0 : index
    %17 = vector.load %arg5[%c0_12, %c0_13] : memref<128x64xbf16, #tpu.memory_space<vmem>>, vector<128x64xbf16>
    %cst_14 = arith.constant dense<0.000000e+00> : vector<16x64xf32>
    %18 = tpu.matmul %16, %17, %cst_14 {dimension_numbers = #tpu.dot_dimension_numbers<[1], [0], [0], [1], [0, 0, 1, 1], [], []>} : vector<16x128xbf16>, vector<128x64xbf16>, vector<16x64xf32> -> vector<16x64xf32>
    %c0_15 = arith.constant 0 : index
    %c0_16 = arith.constant 0 : index
    %19 = vector.load %arg6[%c0_15, %c0_16] : memref<1x64xf32, #tpu.memory_space<vmem>>, vector<1x64xf32>
    %20 = vector.broadcast %19 : vector<1x64xf32> to vector<16x64xf32>
    %21 = arith.addf %18, %20 : vector<16x64xf32>
    %cst_17 = arith.constant 0.000000e+00 : f32
    %22 = vector.broadcast %cst_17 : f32 to vector<16x64xf32>
    %23 = arith.maximumf %21, %22 : vector<16x64xf32>
    %24 = arith.truncf %23 : vector<16x64xf32> to vector<16x64xbf16>
    %c0_18 = arith.constant 0 : index
    %c0_19 = arith.constant 0 : index
    %25 = vector.load %arg7[%c0_18, %c0_19] : memref<64x256xbf16, #tpu.memory_space<vmem>>, vector<64x256xbf16>
    %cst_20 = arith.constant dense<0.000000e+00> : vector<16x256xf32>
    %26 = tpu.matmul %24, %25, %cst_20 {dimension_numbers = #tpu.dot_dimension_numbers<[1], [0], [0], [1], [0, 0, 1, 1], [], []>} : vector<16x64xbf16>, vector<64x256xbf16>, vector<16x256xf32> -> vector<16x256xf32>
    %c0_21 = arith.constant 0 : index
    %c0_22 = arith.constant 0 : index
    %27 = vector.load %arg8[%c0_21, %c0_22] : memref<1x256xf32, #tpu.memory_space<vmem>>, vector<1x256xf32>
    %28 = vector.broadcast %27 : vector<1x256xf32> to vector<16x256xf32>
    %29 = arith.addf %26, %28 : vector<16x256xf32>
    %30 = vector.extract_strided_slice %29 {offsets = [0, 0], sizes = [16, 128], strides = [1, 1]} : vector<16x256xf32> to vector<16x128xf32>
    %31 = math.tanh %30 : vector<16x128xf32>
    %cst_23 = arith.constant 2.000000e+00 : f32
    %32 = vector.broadcast %cst_23 : f32 to vector<16x128xf32>
    %33 = arith.mulf %31, %32 : vector<16x128xf32>
    %34 = vector.extract_strided_slice %29 {offsets = [0, 128], sizes = [16, 128], strides = [1, 1]} : vector<16x256xf32> to vector<16x128xf32>
    %cst_24 = arith.constant 0.000000e+00 : f32
    %35 = vector.broadcast %cst_24 : f32 to vector<16x128xf32>
    %36 = arith.maximumf %34, %35 : vector<16x128xf32>
    %37 = math.absf %34 : vector<16x128xf32>
    %cst_25 = arith.constant 0.000000e+00 : f32
    %38 = vector.broadcast %cst_25 : f32 to vector<16x128xf32>
    %39 = arith.subf %38, %37 : vector<16x128xf32>
    %40 = math.exp %39 : vector<16x128xf32>
    %41 = math.log1p %40 : vector<16x128xf32>
    %42 = arith.addf %36, %41 : vector<16x128xf32>
    %cst_26 = arith.constant 3.500000e-01 : f32
    %43 = vector.broadcast %cst_26 : f32 to vector<16x128xf32>
    %44 = arith.addf %42, %43 : vector<16x128xf32>
    %c0_27 = arith.constant 0 : index
    %c0_28 = arith.constant 0 : index
    %45 = vector.load %arg9[%c0_27, %c0_28] : memref<16x256xf32, #tpu.memory_space<vmem>>, vector<16x128xf32>
    tpu.vector_store %arg9[%c0_27, %c0_28], %33 {strides = array<i32>} : memref<16x256xf32, #tpu.memory_space<vmem>>, vector<16x128xf32>,
    %c0_29 = arith.constant 0 : index
    %c128 = arith.constant 128 : index
    %46 = vector.load %arg9[%c0_29, %c128] : memref<16x256xf32, #tpu.memory_space<vmem>>, vector<16x128xf32>
    tpu.vector_store %arg9[%c0_29, %c128], %44 {strides = array<i32>} : memref<16x256xf32, #tpu.memory_space<vmem>>, vector<16x128xf32>,
    return
  }
}

</mosaic_0001>

<bundles_post_ra>
// kernel: tpu_custom_call.1
= control target key start
LH: loop header
LB: loop body
LE: loop exit
PB: predicated region body
PF: predicated region fallthrough
CT: control target
= control target key end

     0   :  { %vm53_vm0 = vcmask 1043456   ;;  %v611_v1 = vmov 0.0   ;;  %vm612_vm1 = vmmov 0   ;;  %vm49_vm2 = vcmask 64512   ;;  %s750_s0 = inlined_call_operand.vmem [shape: bf16[16,8], index: 0, kind: input, shape index: {}]   ;;  %s751_s1 = inlined_call_operand.vmem [shape: bf16[8,64], index: 1, kind: input, shape index: {}]   ;;  %s752_s2 = inlined_call_operand.vmem [shape: f32[1,64], index: 2, kind: input, shape index: {}]   ;;  %s753_s3 = inlined_call_operand.vmem [shape: bf16[64,128], index: 3, kind: input, shape index: {}]   ;;  %s754_s4 = inlined_call_operand.vmem [shape: f32[1,128], index: 4, kind: input, shape index: {}]   ;;  %s755_s5 = inlined_call_operand.vmem [shape: bf16[128,64], index: 5, kind: input, shape index: {}]   ;;  %s756_s6 = inlined_call_operand.vmem [shape: f32[1,64], index: 6, kind: input, shape index: {}]   ;;  %s757_s7 = inlined_call_operand.vmem [shape: bf16[64,256], index: 7, kind: input, shape index: {}]   ;;  %s758_s8 = inlined_call_operand.vmem [shape: f32[1,256], index: 8, kind: input, shape index: {}]   ;;  %s759_s9 = inlined_call_operand.hbm [shape: f32[16,256], index: 9, kind: output, shape index: {}]  }
   0x1   :  { %v36_v0 = vld [vmem:[%s751_s1] sm:$0xf]  ;;  %508 = vmatprep.subr.bf16.mxu0 %v611_v1  ;;  %510 = vmatprep.mubr.msk.bf16.mxu0 %vm612_vm1, %v611_v1  ;;  %v553_v4 = vld [vmem:[%s753_s3 + $0x18] sm:$0xff]  }
   0x2   :  { %v55_v2 = vsel %vm53_vm0, %v36_v0, 0  ;;  %v552_v3 = vld [vmem:[%s750_s0] sm:$0xff]   ;;  %514 = vmatprep.subr.bf16.mxu1 %v611_v1  ;;  %522 = vmatprep.mubr.msk.bf16.mxu1 %vm612_vm1, %v611_v1 }
   0x3   :  { %509 = vmatpush3.bf16.msra.mxu0 %v55_v2  ;;  %515 = vmatpush3.bf16.msra.mxu1 %v553_v4 }
   0x4   :  { %526 = vmatprep.subr.bf16.mxu0 %v611_v1  ;;  %516 = vmatprep.subr.bf16.mxu1 %v611_v1 }
   0x6   :  { %511 = vmatmul.mubr.msk.bf16.vlgmr.msra.gmra.mxu0 %vm49_vm2, %v552_v3 }
   0x7   :  { %542 = vmatprep.mubr.msk.bf16.mxu0 %vm612_vm1, %v611_v1 }
   0x8   :  { %14 = vsyncpa [#allocation3], 0  ;;  %v554_v5 = vld [vmem:[%s753_s3 + $0x10] sm:$0xff]   ;;  %v555_v6 = vld [vmem:[%s753_s3 + $0x8] sm:$0xff]   ;;  %vm140_vm3 = vcmask 523264   ;;  %v613_v44 = vmov 0   ;;  %v313_v55 = vlaneseq }
   0x9   :  { %517 = vmatpush3.bf16.msra.mxu1 %v554_v5  ;;  %v556_v7 = vld [vmem:[%s753_s3] sm:$0xff]   ;;  %v557_v8 = vld [vmem:[%s755_s5 + $0x38] sm:$0xff]   ;;  %v558_v9 = vld [vmem:[%s755_s5 + $0x30] sm:$0xff]  }
   0xa   :  { %518 = vmatprep.subr.bf16.mxu1 %v611_v1  ;;  %527 = vmatpush3.bf16.msra.mxu0 %v557_v8  ;;  %v559_v10 = vld [vmem:[%s755_s5 + $0x28] sm:$0xff]   ;;  %v560_v11 = vld [vmem:[%s755_s5 + $0x20] sm:$0xff]   ;;  %v561_v12 = vld [vmem:[%s755_s5 + $0x18] sm:$0xff]   ;;  %v314_v56 = vshrl.u32 %v313_v55, 7 }
   0xb   :  { %528 = vmatprep.subr.bf16.mxu0 %v611_v1  ;;  %v465_v13 = vld [vmem:[%s752_s2] ss:$0 sm:$0xff]  ;;  %v562_v23 = vld [vmem:[%s755_s5 + $0x10] sm:$0xff]   ;;  %v563_v24 = vld [vmem:[%s755_s5 + $0x8] sm:$0xff]  }
   0xc   :  { %v564_v25 = vld [vmem:[%s755_s5] sm:$0xff]   ;;  %v565_v26 = vld [vmem:[%s757_s7 + $0x30] ss:$8 sps:$4 sm:$0xff]   ;;  %v567_v27 = vld [vmem:[%s757_s7 + $0x34] ss:$8 sps:$4 sm:$0xff]   ;;  %v315_v57 = vsub.s32 0, %v314_v56 }
   0xd   :  { %519 = vmatpush3.bf16.msra.mxu1 %v555_v6  ;;  %v570_v28 = vld [vmem:[%s757_s7 + $0x24] ss:$8 sps:$4 sm:$0xff]   ;;  %v568_v29 = vld [vmem:[%s757_s7 + $0x20] ss:$8 sps:$4 sm:$0xff]   ;;  %v573_v40 = vld [vmem:[%s757_s7 + $0x14] ss:$8 sps:$4 sm:$0xff]  }
   0xe   :  { %520 = vmatprep.subr.bf16.mxu1 %v611_v1  ;;  %529 = vmatpush3.bf16.msra.mxu0 %v558_v9  ;;  %v468_v30 = vld [vmem:[%s754_s4] ss:$0 sm:$0xff]  ;;  %v571_v41 = vld [vmem:[%s757_s7 + $0x10] ss:$8 sps:$4 sm:$0xff]   ;;  %v576_v42 = vld [vmem:[%s757_s7 + $0x4] ss:$8 sps:$4 sm:$0xff]  }
   0xf   :  { %530 = vmatprep.subr.bf16.mxu0 %v611_v1  ;;  %v574_v43 = vld [vmem:[%s757_s7] ss:$8 sps:$4 sm:$0xff]   ;;  %v319_v59 = vsub.s32 1, %v314_v56 }
  0x10   :  { %v474_v45 = vld [vmem:[%s756_s6] ss:$0 sm:$0xff]  ;;  %s614_s6 = smov [#allocation2]  }
  0x11   :  { %521 = vmatpush3.bf16.msra.mxu1 %v556_v7  ;;  %v311_v58 = vld [vmem:[%s758_s8] sm:$0x3]  ;;  %s454_s8 = sshll.u32 %s614_s6, 4  ;;  %s455_s8 = int_to_ptr.vmem [resolvable:$true] %s454_s8 }
  0x12   :  { %531 = vmatpush3.bf16.msra.mxu0 %v559_v10  ;;  %374 = vmatprep.subr.bf16.mxu1 %v567_v27  ;;  %v316_v60 = vrot.slane %v311_v58, %v315_v57  ;;  %v320_v61 = vrot.slane %v311_v58, %v319_v59  ;;  %s589_s30 = scalar_lea.vmem %s455_s8, 512  ;;  %p594_p1 = scmp.lt.s32.totalorder %s455_s8, %s455_s8 }
  0x13   :  { %532 = vmatprep.subr.bf16.mxu0 %v611_v1  ;;  %p590_p0 = scmp.ne.s32.totalorder %s455_s8, %s589_s30  ;;  %p595_p2 = scmp.lt.s32.totalorder %s589_s30, %s589_s30 }
  0x15   :  { %p596_p3 = por %p595_p2, %p594_p1 }
  0x16   :  { %533 = vmatpush3.bf16.msra.mxu0 %v560_v11 }
  0x17   :  { %534 = vmatprep.subr.bf16.mxu0 %v611_v1  ;;  %p597_p4 = pnand %p596_p3, %p590_p0 }
  0x1a   :  { %535 = vmatpush3.bf16.msra.mxu0 %v561_v12 }
  0x1b   :  { %536 = vmatprep.subr.bf16.mxu0 %v611_v1 }
  0x1e   :  { %537 = vmatpush3.bf16.msra.mxu0 %v562_v23 }
  0x1f   :  { %538 = vmatprep.subr.bf16.mxu0 %v611_v1 }
  0x22   :  { %539 = vmatpush3.bf16.msra.mxu0 %v563_v24 }
  0x23   :  { %540 = vmatprep.subr.bf16.mxu0 %v611_v1 }
  0x26   :  { %541 = vmatpush3.bf16.msra.mxu0 %v564_v25 }
  0xc6   :  { %v91_v14 = vpop.f32.mrf.mxu0 }
  0xc7   :  { %v92_v16 = vadd.f32 %v465_v13, %v91_v14 }
  0xc8   :  { %v512_v15 = vpop.f32.mrf.mxu0 }
  0xc9   :  { %v98_v20 = vmax.f32 %v92_v16, 0.0 }
  0xca   :  { %v94_v17 = vpop.f32.mrf.mxu0 }
  0xcb   :  { %v95_v18 = vadd.f32 %v465_v13, %v94_v17 }
  0xcc   :  { %v513_v19 = vpop.f32.mrf.mxu0 }
  0xcd   :  { %v99_v21 = vmax.f32 %v95_v18, 0.0 }
  0xcf   :  { %v100_v22 = vpack.c.bf16 %v99_v21, %v98_v20 }
  0xd1   :  { %523 = vmatmul.mubr.msk.bf16.vlgmr.msra.gmra.mxu1 %vm140_vm3, %v100_v22 }
  0xd2   :  { %375 = vmatpush1.bf16.msra.mxu1 %v565_v26  ;;  %398 = vmatprep.mubr.bf16.mxu1 %v613_v44 }
  0xd3   :  { %376 = vmatprep.subr.bf16.mxu1 %v570_v28 }
  0xd6   :  { %377 = vmatpush1.bf16.msra.mxu1 %v568_v29 }
  0xd7   :  { %378 = vmatprep.subr.bf16.mxu1 %v573_v40 }
  0xda   :  { %379 = vmatpush1.bf16.msra.mxu1 %v571_v41 }
  0xdb   :  { %380 = vmatprep.subr.bf16.mxu1 %v576_v42 }
  0xde   :  { %381 = vmatpush1.bf16.msra.mxu1 %v574_v43 }
 0x191   :  { %v178_v31 = vpop.f32.mrf.mxu1 }
 0x192   :  { %v179_v33 = vadd.f32 %v468_v30, %v178_v31 }
 0x193   :  { %v524_v32 = vpop.f32.mrf.mxu1 }
 0x194   :  { %v185_v37 = vmax.f32 %v179_v33, 0.0 }
 0x195   :  { %v181_v34 = vpop.f32.mrf.mxu1 }
 0x196   :  { %v182_v35 = vadd.f32 %v468_v30, %v181_v34 }
 0x197   :  { %v525_v36 = vpop.f32.mrf.mxu1 }
 0x198   :  { %v186_v38 = vmax.f32 %v182_v35, 0.0 }
 0x19a   :  { %v187_v39 = vpack.c.bf16 %v186_v38, %v185_v37 }
 0x19c   :  { %543 = vmatmul.mubr.bf16.vlgmr.msra.gmra.mxu0 %v187_v39 }
 0x25c   :  { %v293_v46 = vpop.f32.mrf.mxu0 }
 0x25d   :  { %v294_v48 = vadd.f32 %v474_v45, %v293_v46 }
 0x25e   :  { %v544_v47 = vpop.f32.mrf.mxu0 }
 0x25f   :  { %v300_v52 = vmax.f32 %v294_v48, 0.0 }
 0x260   :  { %v296_v49 = vpop.f32.mrf.mxu0 }
 0x261   :  { %v297_v50 = vadd.f32 %v474_v45, %v296_v49 }
 0x262   :  { %v545_v51 = vpop.f32.mrf.mxu0 }
 0x263   :  { %v301_v53 = vmax.f32 %v297_v50, 0.0 }
 0x265   :  { %v302_v54 = vpack.c.bf16 %v301_v53, %v300_v52 }
 0x267   :  { %491 = vmatmul.mubr.msk.bf16.vlgmr.msra.gmra.mxu1 %vm140_vm3, %v302_v54 }
 0x327   :  { %v400_v62 = vpop.f32.mrf.mxu1 }
 0x328   :  { %v401_v63 = vadd.f32 %v400_v62, %v316_v60 }
 0x329   :  { %v402_v0 = vpop.f32.mrf.mxu1 }
 0x32a   :  { %577 = vtanh.f32 %v401_v63  ;;  %v403_v1 = vadd.f32 %v402_v0, %v320_v61 }
 0x32b   :  { %v404_v2 = vpop.f32.mrf.mxu1 }
 0x32c   :  { %v415_v3 = vand.u32 2147483647, %v403_v1  ;;  %v405_v4 = vadd.f32 %v404_v2, %v316_v60  ;;  %v413_v28 = vmax.f32 %v403_v1, 0.0 }
 0x32d   :  { %v406_v5 = vpop.f32.mrf.mxu1 }
 0x32e   :  { %v417_v6 = vsub.f32 0.0, %v415_v3  ;;  %579 = vtanh.f32 %v405_v4  ;;  %v407_v7 = vadd.f32 %v406_v5, %v320_v61 }
 0x330   :  { %v419_v8 = vmul.f32 1.442695, %v417_v6  ;;  %v416_v9 = vand.u32 2147483647, %v407_v7  ;;  %v414_v36 = vmax.f32 %v407_v7, 0.0 }
 0x332   :  { %581 = vpow2.f32 %v419_v8  ;;  %v418_v10 = vsub.f32 0.0, %v416_v9 }
 0x334   :  { %v421_v11 = vmul.f32 1.442695, %v418_v10 }
 0x336   :  { %583 = vpow2.f32 %v421_v11 }
 0x337   :  { %v578_v12 = vpop.eup %577 }
 0x338   :  { %v411_v13 = vmul.f32 2.0, %v578_v12 }
 0x33a   :  { %445 = vst [vmem:[#allocation2] sm:$0xff] %v411_v13 }
 0x33b   :  { %v580_v14 = vpop.eup %579 }
 0x33c   :  { %v412_v15 = vmul.f32 2.0, %v580_v14 }
 0x33e   :  { %446 = vst [vmem:[#allocation2 + $0x10] sm:$0xff] %v412_v15 }
 0x33f   :  { %v582_v16 = vpop.eup %581 }
 0x340   :  { %v423_v17 = vadd.f32 1.0, %v582_v16  ;;  %v426_v20 = vmul.f32 -0.5, %v582_v16  ;;  %v429_v23 = vand.u32 2147483647, %v582_v16 }
 0x342   :  { %585 = vlog2.f32 %v423_v17  ;;  %v427_v21 = vadd.f32 1.0, %v426_v20  ;;  %vm430_vm4 = vcmp.lt.f32.partialorder %v429_v23, 0.0004427343 }
 0x343   :  { %v584_v18 = vpop.eup %583 }
 0x344   :  { %v432_v19 = vadd.f32 1.0, %v584_v18  ;;  %v435_v22 = vmul.f32 -0.5, %v584_v18  ;;  %v428_v26 = vmul.f32 %v582_v16, %v427_v21  ;;  %v438_v29 = vand.u32 2147483647, %v584_v18 }
 0x346   :  { %587 = vlog2.f32 %v432_v19  ;;  %v436_v27 = vadd.f32 1.0, %v435_v22  ;;  %vm439_vm5 = vcmp.lt.f32.partialorder %v438_v29, 0.0004427343 }
 0x348   :  { %v437_v34 = vmul.f32 %v584_v18, %v436_v27 }
 0x34f   :  { %v586_v24 = vpop.eup %585 }
 0x350   :  { %v425_v25 = vmul.f32 0.6931472, %v586_v24 }
 0x352   :  { %v431_v30 = vsel %vm430_vm4, %v428_v26, %v425_v25 }
 0x353   :  { %v588_v31 = vpop.eup %587  ;;  %v441_v32 = vadd.f32 %v431_v30, %v413_v28 }
 0x354   :  { %v434_v33 = vmul.f32 0.6931472, %v588_v31 }
 0x355   :  { %v443_v35 = vadd.f32 0.35, %v441_v32 }
 0x356   :  { %v440_v37 = vsel %vm439_vm5, %v437_v34, %v434_v33 }
 0x357   :  { %447 = vst [vmem:[#allocation2 + $0x8] sm:$0xff] %v443_v35  ;;  %v442_v38 = vadd.f32 %v440_v37, %v414_v36 }
 0x359   :  { %v444_v39 = vadd.f32 0.35, %v442_v38 }
 0x35b   :  { %448 = vst [vmem:[#allocation2 + $0x18] sm:$0xff] %v444_v39 }
 0x35c   :  { %600 = shalt.err (!%p597_p4)
}
 0x35d   :  { %s615_s10 = smov 256   ;;  %s616_s11 = smov 16  }
 0x35e   :  { %460 = dma.vmem_to_hbm [thread:$0]  %s455_s8, 512, %s759_s9, [#allocation3], %s615_s10, %s615_s10, %s616_s11  }
 0x35f   :  { %609 = dma.done.wait [#allocation3], 512  }
 0x360   :  { %610 = vsyncadd [#allocation3], 4294966784 }
 0x361   :  { %464 = vsyncpa [#allocation3], 1 }

</bundles_post_ra>
